<compile_context>
chip_gen: v5e
topology: v5e:2x2
jax: 0.10.0
libtpu: 0.0.40
codegen_flags: <defaults>
</compile_context>

<pallas_src>
import functools
import math

import jax
import jax.numpy as jnp
from jax.experimental import pallas as pl
from jax.experimental.pallas import tpu as pltpu


def _round_up(a, b):
    return (a + b - 1) // b * b


def detr_head_kernel(x_ref, wf_ref, bf_ref, w2_ref, b2_ref, w3_ref, b3_ref,
                     out_ref, *, c_pad):
    # x tile arrives as f32; cast to bf16 on-chip for the MXU.
    x = x_ref[0].astype(jnp.bfloat16)                          # (TN, D)

    # Fused [class_embed | bbox layer 1] matmul (shared LHS x), f32 accumulate.
    y = jnp.dot(x, wf_ref[...], preferred_element_type=jnp.float32) + bf_ref[...]

    # Class logits -> lanes [0, c_pad) of the merged output slab (128-aligned).
    out_ref[:, :c_pad] = y[:, :c_pad].astype(out_ref.dtype)

    # bbox MLP: ReLU / bias in f32 (v5e-safe), bf16 operands into the MXU.
    h = jnp.maximum(y[:, c_pad:], 0.0)
    h = jnp.dot(h.astype(w2_ref.dtype), w2_ref[...],
                preferred_element_type=jnp.float32) + b2_ref[...]
    h = jnp.maximum(h, 0.0)
    b = jnp.dot(h.astype(w3_ref.dtype), w3_ref[...],
                preferred_element_type=jnp.float32) + b3_ref[...]

    # Sigmoid boxes -> lanes [c_pad, c_pad + 128).
    out_ref[:, c_pad:] = jax.nn.sigmoid(b).astype(out_ref.dtype)


def prepare_detr_head_params(params):
    """One-time weight packing (hoisted out of the per-call path).

    Fuses class_embed with bbox layer 1 (shared LHS), zero-pads class columns
    and the final 4-wide box layer to 128-lane multiples, and casts weights to
    bf16 (biases stay f32)."""
    wc, bc, w1, b1, w2, b2, w3, b3 = params
    D, C1 = wc.shape
    c_pad = _round_up(C1, 128)
    box_pad = 128

    wc_p = jnp.pad(wc, ((0, 0), (0, c_pad - C1)))
    bc_p = jnp.pad(bc, ((0, 0), (0, c_pad - C1)))
    wf = jnp.concatenate([wc_p, w1], axis=1).astype(jnp.bfloat16)   # (D, c_pad + D)
    bf = jnp.concatenate([bc_p, b1], axis=1).astype(jnp.float32)    # (1, c_pad + D)
    w2_bf = w2.astype(jnp.bfloat16)                                 # (D, D)
    b2_f = b2.astype(jnp.float32)                                   # (1, D)
    w3_p = jnp.pad(w3, ((0, 0), (0, box_pad - w3.shape[1]))).astype(jnp.bfloat16)
    b3_p = jnp.pad(b3, ((0, 0), (0, box_pad - b3.shape[1]))).astype(jnp.float32)
    return (wf, bf, w2_bf, b2_f, w3_p, b3_p)


@functools.partial(jax.jit, static_argnames=("num_classes", "row_tile"))
def detr_head_forward(x, packed, num_classes, row_tile=None):
    """x: (L, B, Q, D) f32 decoder output; packed: prepare_detr_head_params(...).
    Returns {'pred_logits': (B, Q, num_classes+1), 'pred_boxes': (B, Q, 4)}."""
    L, B, Q, D = x.shape
    wf, bf, w2, b2, w3, b3 = packed
    C1 = num_classes + 1
    C_PAD = wf.shape[1] - D
    BOX_PAD = w3.shape[1]
    N = B * Q

    # Row tile: large for HBM-stream efficiency, multiple of 16 (bf16 sublanes),
    # and capped so the grid has >= 2 "parallel" steps when N allows (v7x 2 TCs).
    if row_tile is None:
        row_tile = 512 if N >= 4096 else 256
    row_tile = max(16, _round_up(row_tile, 16))
    row_tile = min(row_tile, _round_up(N, 16))
    if N > 16:
        row_tile = min(row_tile, _round_up(pl.cdiv(N, 2), 16))

    x3 = x.reshape(L, N, D)            # metadata-only under jit
    last = L - 1
    grid = (pl.cdiv(N, row_tile),)     # ragged last block handled by Pallas

    def const_spec(shape):
        # Grid-invariant operand: fetched once, single-buffered.
        return pl.BlockSpec(shape, lambda i: (0, 0), pipeline_mode=pl.Buffered(1))

    kernel = functools.partial(detr_head_kernel, c_pad=C_PAD)

    out = pl.pallas_call(
        kernel,
        out_shape=jax.ShapeDtypeStruct((N, C_PAD + BOX_PAD), jnp.float32),
        grid_spec=pltpu.PrefetchScalarGridSpec(
            num_scalar_prefetch=0,
            grid=grid,
            in_specs=[
                pl.BlockSpec((1, row_tile, D), lambda i: (last, i, 0)),  # x (last layer only)
                const_spec((D, C_PAD + D)),      # fused Wc | W1
                const_spec((1, C_PAD + D)),      # fused bc | b1
                const_spec((D, D)),              # W2
                const_spec((1, D)),              # b2
                const_spec((D, BOX_PAD)),        # W3 (lane-padded)
                const_spec((1, BOX_PAD)),        # b3 (lane-padded)
            ],
            out_specs=pl.BlockSpec((row_tile, C_PAD + BOX_PAD), lambda i: (i, 0)),
        ),
        compiler_params=pltpu.CompilerParams(
            dimension_semantics=("parallel",)),
    )(x3, wf, bf, w2, b2, w3, b3)

    logits = out[:, :C1].reshape(B, Q, C1)
    boxes = out[:, C_PAD:C_PAD + 4].reshape(B, Q, 4)
    # TODO(synk): aux_outputs branch (detect_aux_loss=True) intentionally omitted
    # (module default is False); it would compute/slice all L layers.
    return {"pred_logits": logits, "pred_boxes": boxes}


def init_linear(key, fan_in, fan_out):
    """PyTorch nn.Linear default init: U(-1/sqrt(fan_in), 1/sqrt(fan_in))."""
    kw, kb = jax.random.split(key)
    bound = 1.0 / math.sqrt(fan_in)
    w = jax.random.uniform(kw, (fan_in, fan_out), jnp.float32, -bound, bound)
    b = jax.random.uniform(kb, (1, fan_out), jnp.float32, -bound, bound)
    return w, b


def make_params(key, hidden_dim, num_classes):
    keys = jax.random.split(key, 4)
    wc, bc = init_linear(keys[0], hidden_dim, num_classes + 1)   # class_embed
    w1, b1 = init_linear(keys[1], hidden_dim, hidden_dim)        # bbox_embed.layers[0]
    w2, b2 = init_linear(keys[2], hidden_dim, hidden_dim)        # bbox_embed.layers[1]
    w3, b3 = init_linear(keys[3], hidden_dim, 4)                 # bbox_embed.layers[2]
    return (wc, bc, w1, b1, w2, b2, w3, b3)


def detr_head_reference(x, params):
    wc, bc, w1, b1, w2, b2, w3, b3 = params
    logits = x @ wc + bc
    h = jax.nn.relu(x @ w1 + b1)
    h = jax.nn.relu(h @ w2 + b2)
    boxes = jax.nn.sigmoid(h @ w3 + b3)
    return {"pred_logits": logits[-1], "pred_boxes": boxes[-1]}


if __name__ == "__main__":
    # Small shapes consistent with a DETR decoder output: (L, B, Q, D)
    L, B, Q, D = 2, 2, 8, 32
    num_classes = 5          # class_embed output dim = num_classes + 1 = 6

    key = jax.random.PRNGKey(0)
    kx, kp = jax.random.split(key)
    x = jax.random.normal(kx, (L, B, Q, D), dtype=jnp.float32)
    params = make_params(kp, D, num_classes)

    packed = prepare_detr_head_params(params)      # one-time weight packing
    packed = jax.block_until_ready(packed)

    out = detr_head_forward(x, packed, num_classes)
    jax.block_until_ready(out)

    ref = detr_head_reference(x, params)
    assert out["pred_logits"].shape == (B, Q, num_classes + 1)
    assert out["pred_boxes"].shape == (B, Q, 4)
    # bf16 operands with f32 accumulation -> ~1e-2 level agreement with f32 ref.
    assert jnp.allclose(out["pred_logits"], ref["pred_logits"], atol=5e-2, rtol=5e-2)
    assert jnp.allclose(out["pred_boxes"], ref["pred_boxes"], atol=5e-2, rtol=5e-2)

    print("KERNEL_OK")
</pallas_src>

<mosaic_0001>
module attributes {stable_mosaic.version = 11 : i64} {
  func.func @detr_head_kernel(%arg0: i32, %arg1: memref<1x16x32xf32, #tpu.memory_space<vmem>>, %arg2: memref<32x160xbf16, #tpu.memory_space<vmem>>, %arg3: memref<1x160xf32, #tpu.memory_space<vmem>>, %arg4: memref<32x32xbf16, #tpu.memory_space<vmem>>, %arg5: memref<1x32xf32, #tpu.memory_space<vmem>>, %arg6: memref<32x128xbf16, #tpu.memory_space<vmem>>, %arg7: memref<1x128xf32, #tpu.memory_space<vmem>>, %arg8: memref<16x256xf32, #tpu.memory_space<vmem>>) attributes {dimension_semantics = [#tpu.dimension_semantics<parallel>], iteration_bounds = array<i64: 1>, scalar_prefetch = 0 : i64, scratch_operands = 0 : i64, tpu.core_type = #tpu.core_type<tc>, window_params = [{transform_indices = @transform_0, window_bounds = array<i64: 1, 16, 32>}, {pipeline_mode = #tpu.pipeline_mode<synchronous>, transform_indices = @transform_1, window_bounds = array<i64: 32, 160>}, {pipeline_mode = #tpu.pipeline_mode<synchronous>, transform_indices = @transform_2, window_bounds = array<i64: 1, 160>}, {pipeline_mode = #tpu.pipeline_mode<synchronous>, transform_indices = @transform_3, window_bounds = array<i64: 32, 32>}, {pipeline_mode = #tpu.pipeline_mode<synchronous>, transform_indices = @transform_4, window_bounds = array<i64: 1, 32>}, {pipeline_mode = #tpu.pipeline_mode<synchronous>, transform_indices = @transform_5, window_bounds = array<i64: 32, 128>}, {pipeline_mode = #tpu.pipeline_mode<synchronous>, transform_indices = @transform_6, window_bounds = array<i64: 1, 128>}, {transform_indices = @transform_7, window_bounds = array<i64: 16, 256>}]} {
    %c0 = arith.constant 0 : index
    %c0_0 = arith.constant 0 : index
    %c0_1 = arith.constant 0 : index
    %0 = vector.load %arg1[%c0, %c0_0, %c0_1] : memref<1x16x32xf32, #tpu.memory_space<vmem>>, vector<1x16x32xf32>
    %1 = vector.shape_cast %0 : vector<1x16x32xf32> to vector<16x32xf32>
    %2 = arith.truncf %1 : vector<16x32xf32> to vector<16x32xbf16>
    %c0_2 = arith.constant 0 : index
    %c0_3 = arith.constant 0 : index
    %3 = vector.load %arg2[%c0_2, %c0_3] : memref<32x160xbf16, #tpu.memory_space<vmem>>, vector<32x160xbf16>
    %cst = arith.constant dense<0.000000e+00> : vector<16x160xf32>
    %4 = tpu.matmul %2, %3, %cst {dimension_numbers = #tpu.dot_dimension_numbers<[1], [0], [0], [1], [0, 0, 1, 1], [], []>} : vector<16x32xbf16>, vector<32x160xbf16>, vector<16x160xf32> -> vector<16x160xf32>
    %c0_4 = arith.constant 0 : index
    %c0_5 = arith.constant 0 : index
    %5 = vector.load %arg3[%c0_4, %c0_5] : memref<1x160xf32, #tpu.memory_space<vmem>>, vector<1x160xf32>
    %6 = vector.broadcast %5 : vector<1x160xf32> to vector<16x160xf32>
    %7 = arith.addf %4, %6 : vector<16x160xf32>
    %8 = vector.extract_strided_slice %7 {offsets = [0, 0], sizes = [16, 128], strides = [1, 1]} : vector<16x160xf32> to vector<16x128xf32>
    %c0_6 = arith.constant 0 : index
    %c0_7 = arith.constant 0 : index
    %9 = vector.load %arg8[%c0_6, %c0_7] : memref<16x256xf32, #tpu.memory_space<vmem>>, vector<16x128xf32>
    tpu.vector_store %arg8[%c0_6, %c0_7], %8 {strides = array<i32>} : memref<16x256xf32, #tpu.memory_space<vmem>>, vector<16x128xf32>,
    %10 = vector.extract_strided_slice %7 {offsets = [0, 128], sizes = [16, 32], strides = [1, 1]} : vector<16x160xf32> to vector<16x32xf32>
    %cst_8 = arith.constant 0.000000e+00 : f32
    %11 = vector.broadcast %cst_8 : f32 to vector<16x32xf32>
    %12 = arith.maximumf %10, %11 : vector<16x32xf32>
    %13 = arith.truncf %12 : vector<16x32xf32> to vector<16x32xbf16>
    %c0_9 = arith.constant 0 : index
    %c0_10 = arith.constant 0 : index
    %14 = vector.load %arg4[%c0_9, %c0_10] : memref<32x32xbf16, #tpu.memory_space<vmem>>, vector<32x32xbf16>
    %cst_11 = arith.constant dense<0.000000e+00> : vector<16x32xf32>
    %15 = tpu.matmul %13, %14, %cst_11 {dimension_numbers = #tpu.dot_dimension_numbers<[1], [0], [0], [1], [0, 0, 1, 1], [], []>} : vector<16x32xbf16>, vector<32x32xbf16>, vector<16x32xf32> -> vector<16x32xf32>
    %c0_12 = arith.constant 0 : index
    %c0_13 = arith.constant 0 : index
    %16 = vector.load %arg5[%c0_12, %c0_13] : memref<1x32xf32, #tpu.memory_space<vmem>>, vector<1x32xf32>
    %17 = vector.broadcast %16 : vector<1x32xf32> to vector<16x32xf32>
    %18 = arith.addf %15, %17 : vector<16x32xf32>
    %cst_14 = arith.constant 0.000000e+00 : f32
    %19 = vector.broadcast %cst_14 : f32 to vector<16x32xf32>
    %20 = arith.maximumf %18, %19 : vector<16x32xf32>
    %21 = arith.truncf %20 : vector<16x32xf32> to vector<16x32xbf16>
    %c0_15 = arith.constant 0 : index
    %c0_16 = arith.constant 0 : index
    %22 = vector.load %arg6[%c0_15, %c0_16] : memref<32x128xbf16, #tpu.memory_space<vmem>>, vector<32x128xbf16>
    %cst_17 = arith.constant dense<0.000000e+00> : vector<16x128xf32>
    %23 = tpu.matmul %21, %22, %cst_17 {dimension_numbers = #tpu.dot_dimension_numbers<[1], [0], [0], [1], [0, 0, 1, 1], [], []>} : vector<16x32xbf16>, vector<32x128xbf16>, vector<16x128xf32> -> vector<16x128xf32>
    %c0_18 = arith.constant 0 : index
    %c0_19 = arith.constant 0 : index
    %24 = vector.load %arg7[%c0_18, %c0_19] : memref<1x128xf32, #tpu.memory_space<vmem>>, vector<1x128xf32>
    %25 = vector.broadcast %24 : vector<1x128xf32> to vector<16x128xf32>
    %26 = arith.addf %23, %25 : vector<16x128xf32>
    %27 = arith.negf %26 : vector<16x128xf32>
    %28 = math.exp %27 : vector<16x128xf32>
    %cst_20 = arith.constant 1.000000e+00 : f32
    %29 = vector.broadcast %cst_20 : f32 to vector<16x128xf32>
    %30 = arith.addf %29, %28 : vector<16x128xf32>
    %31 = arith.divf %29, %30 : vector<16x128xf32>
    %c0_21 = arith.constant 0 : index
    %c128 = arith.constant 128 : index
    %32 = vector.load %arg8[%c0_21, %c128] : memref<16x256xf32, #tpu.memory_space<vmem>>, vector<16x128xf32>
    tpu.vector_store %arg8[%c0_21, %c128], %31 {strides = array<i32>} : memref<16x256xf32, #tpu.memory_space<vmem>>, vector<16x128xf32>,
    return
  }
  func.func @transform_0(%arg0: i32) -> (i32, i32, i32) {
    %c1_i32 = arith.constant 1 : i32
    %c0_i32 = arith.constant 0 : i32
    %c0_i32_0 = arith.constant 0 : i32
    return %c1_i32, %arg0, %c0_i32 : i32, i32, i32
  }
  func.func @transform_1(%arg0: i32) -> (i32, i32) {
    %c0_i32 = arith.constant 0 : i32
    %c0_i32_0 = arith.constant 0 : i32
    %c0_i32_1 = arith.constant 0 : i32
    return %c0_i32, %c0_i32_0 : i32, i32
  }
  func.func @transform_2(%arg0: i32) -> (i32, i32) {
    %c0_i32 = arith.constant 0 : i32
    %c0_i32_0 = arith.constant 0 : i32
    %c0_i32_1 = arith.constant 0 : i32
    return %c0_i32, %c0_i32_0 : i32, i32
  }
  func.func @transform_3(%arg0: i32) -> (i32, i32) {
    %c0_i32 = arith.constant 0 : i32
    %c0_i32_0 = arith.constant 0 : i32
    %c0_i32_1 = arith.constant 0 : i32
    return %c0_i32, %c0_i32_0 : i32, i32
  }
  func.func @transform_4(%arg0: i32) -> (i32, i32) {
    %c0_i32 = arith.constant 0 : i32
    %c0_i32_0 = arith.constant 0 : i32
    %c0_i32_1 = arith.constant 0 : i32
    return %c0_i32, %c0_i32_0 : i32, i32
  }
  func.func @transform_5(%arg0: i32) -> (i32, i32) {
    %c0_i32 = arith.constant 0 : i32
    %c0_i32_0 = arith.constant 0 : i32
    %c0_i32_1 = arith.constant 0 : i32
    return %c0_i32, %c0_i32_0 : i32, i32
  }
  func.func @transform_6(%arg0: i32) -> (i32, i32) {
    %c0_i32 = arith.constant 0 : i32
    %c0_i32_0 = arith.constant 0 : i32
    %c0_i32_1 = arith.constant 0 : i32
    return %c0_i32, %c0_i32_0 : i32, i32
  }
  func.func @transform_7(%arg0: i32) -> (i32, i32) {
    %c0_i32 = arith.constant 0 : i32
    %c0_i32_0 = arith.constant 0 : i32
    return %arg0, %c0_i32 : i32, i32
  }
}

</mosaic_0001>

<bundles_post_ra>
// kernel: detr_head_forward.1
= control target key start
LH: loop header
LB: loop body
LE: loop exit
PB: predicated region body
PF: predicated region fallthrough
CT: control target
= control target key end

     0   :  { %12 = vsyncpa [#allocation3], 0  ;;  %s575_s0 = inlined_call_operand.hbm [shape: f32[2,16,32], index: 0, kind: input, shape index: {}]   ;;  %s576_s1 = inlined_call_operand.hbm [shape: bf16[32,160], index: 1, kind: input, shape index: {}]   ;;  %s577_s2 = inlined_call_operand.vmem [shape: f32[1,160], index: 2, kind: input, shape index: {}]   ;;  %s578_s3 = inlined_call_operand.hbm [shape: bf16[32,32], index: 3, kind: input, shape index: {}]   ;;  %s579_s4 = inlined_call_operand.vmem [shape: f32[1,32], index: 4, kind: input, shape index: {}]   ;;  %s580_s5 = inlined_call_operand.hbm [shape: bf16[32,128], index: 5, kind: input, shape index: {}]   ;;  %s581_s6 = inlined_call_operand.hbm [shape: f32[1,128], index: 6, kind: input, shape index: {}]   ;;  %s582_s7 = inlined_call_operand.vmem [shape: f32[16,256], index: 7, kind: output, shape index: {}]  }
   0x1   :  { %13 = vsyncpa [#allocation5], 0 }
   0x2   :  { %14 = vsyncpa [#allocation8], 0  ;;  %s33_s26 = sshll.u32 %s576_s1, 4  ;;  %s489_s27 = smov [#allocation4]   ;;  %s34_s26 = int_to_ptr.hbm [resolvable:$true] %s33_s26 }
   0x3   :  { %s35_s28 = sshll.u32 %s489_s27, 4  ;;  %s490_s29 = smov 128   ;;  %s36_s28 = int_to_ptr.vmem [resolvable:$true] %s35_s28 }
   0x4   :  { %s491_s30 = smov 8   ;;  %s63_s10 = sshll.u32 %s580_s5, 4  ;;  %s64_s10 = int_to_ptr.hbm [resolvable:$true] %s63_s10 }
   0x5   :  { %41 = dma.hbm_to_vmem [thread:$0]  %s34_s26, 512, %s36_s28, [#allocation5], %s490_s29, %s490_s29, %s491_s30  }
   0x6   :  { %s492_s11 = smov [#allocation7]   ;;  %s19_s15 = scalar_lea.hbm %s575_s0, 16 }
   0x7   :  { %s65_s12 = sshll.u32 %s492_s11, 4  ;;  %s20_s1 = sshll.u32 %s19_s15, 4  ;;  %s66_s12 = int_to_ptr.vmem [resolvable:$true] %s65_s12  ;;  %s21_s1 = int_to_ptr.hbm [resolvable:$true] %s20_s1 }
   0x8   :  { %s493_s16 = smov 64   ;;  %s494_s17 = smov 4  }
   0x9   :  { %71 = dma.hbm_to_vmem [thread:$0]  %s64_s10, 256, %s66_s12, [#allocation8], %s493_s16, %s493_s16, %s494_s17  }
   0xa   :  { %s495_s18 = smov [#allocation2]   ;;  %s48_s22 = sshll.u32 %s578_s3, 4  ;;  %s49_s22 = int_to_ptr.hbm [resolvable:$true] %s48_s22 }
   0xb   :  { %s22_s19 = sshll.u32 %s495_s18, 4  ;;  %s77_s24 = sshll.u32 %s581_s6, 4  ;;  %s23_s19 = int_to_ptr.vmem [resolvable:$true] %s22_s19  ;;  %s78_s24 = int_to_ptr.hbm [resolvable:$true] %s77_s24 }
   0xc   :  { %28 = dma.hbm_to_vmem [thread:$0]  %s21_s1, 256, %s23_s19, [#allocation3], %s490_s29, %s490_s29, %s491_s30  }
   0xd   :  { %s496_s0 = smov [#allocation6]   ;;  %s497_s26 = smov [#allocation9]  }
   0xe   :  { %s50_s25 = sshll.u32 %s496_s0, 4  ;;  %s79_s27 = sshll.u32 %s497_s26, 4  ;;  %s51_s25 = int_to_ptr.vmem [resolvable:$true] %s50_s25  ;;  %s80_s27 = int_to_ptr.vmem [resolvable:$true] %s79_s27 }
   0xf   :  { %56 = dma.hbm_to_vmem [thread:$0]  %s49_s22, 256, %s51_s25, [#allocation5], %s493_s16, %s493_s16, %s494_s17  }
  0x10   :  { %82 = dma.hbm_to_vmem [thread:$0]  %s78_s24, 16, %s80_s27, [#allocation8]  }
  0x11   :  { %483 = dma.done.wait [#allocation3], 256  }
  0x12   :  { %484 = vsyncadd [#allocation3], 4294967040 }
  0x13   :  { %485 = dma.done.wait [#allocation5], 768  }
  0x14   :  { %486 = vsyncadd [#allocation5], 4294966528 }
  0x15   :  { %487 = dma.done.wait [#allocation8], 272  }
  0x16   :  { %488 = vsyncadd [#allocation8], 4294967024  ;;  %v338_v0 = vld [vmem:[#allocation4 + $0x14] sm:$0xf]  ;;  %v310_v1 = vld [vmem:[#allocation4 + $0x18] sm:$0xf0] }
  0x17   :  { %v336_v2 = vld [vmem:[#allocation4 + $0x4] sm:$0xf]  ;;  %v313_v3 = vor.u32 %v338_v0, %v310_v1  ;;  %v302_v4 = vld [vmem:[#allocation4 + $0x8] sm:$0xf0]  ;;  %v104_v6 = vld [vmem:[#allocation2] sm:$0xff]  ;;  %vm137_vm0 = vcmask 261120  }
  0x18   :  { %v305_v5 = vor.u32 %v336_v2, %v302_v4  ;;  %v105_v7 = vld [vmem:[#allocation2 + $0x8] sm:$0xff]  ;;  %v341_v9 = vld [vmem:[#allocation6 + $0x8] sm:$0xff]  ;;  %v340_v10 = vld [vmem:[#allocation6] sm:$0xff] }
  0x19   :  { %161 = vmatpush.bf16.msra.mxu1 %v313_v3  ;;  %v106_v8 = vpack.c.bf16 %v105_v7, %v104_v6  ;;  %203 = vmatpush.bf16.msra.mxu2 %v341_v9  ;;  %v111_v11 = vld [vmem:[%s577_s2] sm:$0x3]  ;;  %v343_v20 = vld [vmem:[#allocation7 + $0x8] sm:$0xff]  ;;  %v300_v24 = vld [vmem:[#allocation4] sm:$0xf] }
  0x1a   :  { %v114_v13 = vperm.slane %v111_v11, 1  ;;  %243 = vmatpush.bf16.msra.mxu3 %v343_v20  ;;  %v342_v21 = vld [vmem:[#allocation7] sm:$0xff]  ;;  %v339_v23 = vld [vmem:[#allocation4 + $0x14] sm:$0xf0]  ;;  %v337_v26 = vld [vmem:[#allocation4 + $0x4] sm:$0xf0] }
  0x1b   :  { %v308_v22 = vld [vmem:[#allocation4 + $0x10] sm:$0xf]  ;;  %v301_v27 = vor.u32 %v337_v26, %v300_v24  ;;  %v113_v37 = vperm.slane %v111_v11, 0  ;;  %v354_v39 = vld [vmem:[#allocation9] ss:$0 sm:$0xff] }
  0x1c   :  { %v309_v25 = vor.u32 %v339_v23, %v308_v22  ;;  %v353_v29 = vld [vmem:[%s579_s4] ss:$0 sm:$0xff] }
  0x1d   :  { %162 = vmatpush.bf16.msra.mxu1 %v305_v5  ;;  %204 = vmatpush.bf16.msra.mxu2 %v340_v10 }
  0x1e   :  { %244 = vmatpush.bf16.msra.mxu3 %v342_v21  ;;  %147 = vmatpush.bf16.msra.mxu0 %v309_v25 }
  0x20   :  { %315 = vmatmul.msk.bf16.vlgmr.msra.gmra.mxu1 %vm137_vm0, %v106_v8 }
  0x22   :  { %148 = vmatpush.bf16.msra.mxu0 %v301_v27 }
  0x25   :  { %314 = vmatmul.msk.bf16.vlgmr.msra.gmra.mxu0 %vm137_vm0, %v106_v8 }
  0x9d   :  { %v164_v12 = vpop.f32.mrf.mxu1 }
  0x9e   :  { %v165_v14 = vadd.f32 %v164_v12, %v114_v13 }
  0xa0   :  { %v171_v17 = vmax.f32 %v165_v14, 0.0 }
  0xa2   :  { %v150_v36 = vpop.f32.mrf.mxu0 }
  0xa3   :  { %v151_v40 = vadd.f32 %v150_v36, %v113_v37 }
  0xa5   :  { %v166_v15 = vpop.f32.mrf.mxu1  ;;  %169 = vst [vmem:[%s582_s7] sm:$0xff] %v151_v40 }
  0xa6   :  { %v167_v16 = vadd.f32 %v166_v15, %v114_v13 }
  0xa8   :  { %v172_v18 = vmax.f32 %v167_v16, 0.0 }
  0xaa   :  { %v173_v19 = vpack.c.bf16 %v172_v18, %v171_v17  ;;  %v152_v38 = vpop.f32.mrf.mxu0 }
  0xab   :  { %v153_v41 = vadd.f32 %v152_v38, %v113_v37 }
  0xac   :  { %324 = vmatmul.msk.bf16.vlgmr.msra.gmra.mxu2 %vm137_vm0, %v173_v19 }
  0xad   :  { %170 = vst [vmem:[%s582_s7 + $0x10] sm:$0xff] %v153_v41 }
 0x12f   :  { %v206_v28 = vpop.f32.mrf.mxu2 }
 0x130   :  { %v207_v30 = vadd.f32 %v353_v29, %v206_v28 }
 0x132   :  { %v211_v33 = vmax.f32 %v207_v30, 0.0 }
 0x137   :  { %v208_v31 = vpop.f32.mrf.mxu2 }
 0x138   :  { %v209_v32 = vadd.f32 %v353_v29, %v208_v31 }
 0x13a   :  { %v212_v34 = vmax.f32 %v209_v32, 0.0 }
 0x13c   :  { %v213_v35 = vpack.c.bf16 %v212_v34, %v211_v33 }
 0x13e   :  { %333 = vmatmul.msk.bf16.vlgmr.msra.gmra.mxu3 %vm137_vm0, %v213_v35 }
 0x1c1   :  { %v246_v42 = vpop.f32.mrf.mxu3 }
 0x1c2   :  { %v247_v43 = vadd.f32 %v354_v39, %v246_v42 }
 0x1c4   :  { %v334_v44 = vmul.f32 -1.442695, %v247_v43 }
 0x1c6   :  { %355 = vpow2.f32 %v334_v44 }
 0x1c9   :  { %v248_v45 = vpop.f32.mrf.mxu3 }
 0x1ca   :  { %v249_v46 = vadd.f32 %v354_v39, %v248_v45 }
 0x1cc   :  { %v356_v47 = vpop.eup %355  ;;  %v335_v48 = vmul.f32 -1.442695, %v249_v46 }
 0x1cd   :  { %v257_v49 = vadd.f32 1.0, %v356_v47 }
 0x1ce   :  { %357 = vpow2.f32 %v335_v48 }
 0x1cf   :  { %359 = vrcp.f32 %v257_v49  ;;  %v270_v55 = vand.u32 2147483648, %v257_v49  ;;  %v268_v57 = vand.u32 2147483647, %v257_v49  ;;  %vm264_vm2 = vweird.f32 %v257_v49 }
 0x1d1   :  { %v271_v60 = vor.u32 1.1754944e-38, %v270_v55  ;;  %vm269_vm4 = vcmp.eq.f32.partialorder %v268_v57, 8.507059e+37 }
 0x1d4   :  { %v358_v50 = vpop.eup %357 }
 0x1d5   :  { %v360_v51 = vpop.eup %359  ;;  %v258_v52 = vadd.f32 1.0, %v358_v50 }
 0x1d6   :  { %v260_v53 = vmul.f32 %v360_v51, %v257_v49  ;;  %vm265_vm1 = vweird.f32 %v360_v51 }
 0x1d7   :  { %361 = vrcp.f32 %v258_v52  ;;  %vm266_vm3 = vmor %vm264_vm2, %vm265_vm1  ;;  %v285_v1 = vand.u32 2147483648, %v258_v52  ;;  %v283_v3 = vand.u32 2147483647, %v258_v52  ;;  %vm279_vm6 = vweird.f32 %v258_v52 }
 0x1d8   :  { %v261_v54 = vsub.f32 1.0, %v260_v53 }
 0x1d9   :  { %v286_v5 = vor.u32 1.1754944e-38, %v285_v1  ;;  %vm284_vm8 = vcmp.eq.f32.partialorder %v283_v3, 8.507059e+37 }
 0x1da   :  { %v262_v56 = vmul.f32 %v360_v51, %v261_v54 }
 0x1dc   :  { %v263_v58 = vadd.f32 %v360_v51, %v262_v56 }
 0x1dd   :  { %v362_v59 = vpop.eup %361 }
 0x1de   :  { %v267_v61 = vsel %vm266_vm3, %v360_v51, %v263_v58  ;;  %v275_v62 = vmul.f32 %v362_v59, %v258_v52  ;;  %vm280_vm5 = vweird.f32 %v362_v59 }
 0x1df   :  { %v272_v63 = vsel %vm269_vm4, %v271_v60, %v267_v61  ;;  %vm281_vm7 = vmor %vm279_vm6, %vm280_vm5 }
 0x1e0   :  { %289 = vst [vmem:[%s582_s7 + $0x8] sm:$0xff] %v272_v63  ;;  %v276_v0 = vsub.f32 1.0, %v275_v62 }
 0x1e2   :  { %v277_v2 = vmul.f32 %v362_v59, %v276_v0 }
 0x1e4   :  { %v278_v4 = vadd.f32 %v362_v59, %v277_v2 }
 0x1e6   :  { %v282_v6 = vsel %vm281_vm7, %v362_v59, %v278_v4 }
 0x1e7   :  { %v287_v7 = vsel %vm284_vm8, %v286_v5, %v282_v6 }
 0x1e8   :  { %290 = vst [vmem:[%s582_s7 + $0x18] sm:$0xff] %v287_v7 }
 0x1e9   :  { %295 = vsyncpa [#allocation3], 1 }
 0x1ea   :  { %296 = vsyncpa [#allocation5], 1 }
 0x1eb   :  { %297 = vsyncpa [#allocation8], 1 }

</bundles_post_ra>
